<compile_context>
chip_gen: v7x
topology: tpu7x:2x2x1
jax: 0.10.0
libtpu: 0.0.40
codegen_flags: <defaults>
</compile_context>

<pallas_src>
import functools
import math

import jax
import jax.numpy as jnp
from jax.experimental import pallas as pl
from jax.experimental.pallas import tpu as pltpu


def _mask_predictor_kernel(x_ref, w_ref, b_ref, o_ref, *, C, HW, do_softmax):
    # x_ref: [tb, C*HW] (source dtype)   w_ref: [C, O] f32   b_ref: [1, O] f32   o_ref: [tb, O] f32
    inv_hw = 1.0 / HW
    cols = []
    for c in range(C):  # C is a small static constant (e.g. 4): static lane slices, no relayout
        xc = x_ref[:, c * HW:(c + 1) * HW].astype(jnp.float32)           # [tb, HW]
        cols.append(jnp.sum(xc, axis=-1, keepdims=True) * inv_hw)        # [tb, 1] spatial mean
    pooled = jnp.concatenate(cols, axis=-1)                              # [tb, C]

    if do_softmax:
        m = jnp.max(pooled, axis=-1, keepdims=True)
        e = jnp.exp(pooled - m)
        s = jnp.sum(e, axis=-1, keepdims=True)
        pooled = e * pl.reciprocal(s, approx=True)                       # EUP slot, ~free

    # Conv2d(H, out_features, 1, bias=True) on a [tb, C, 1, 1] tensor == dense layer.
    o_ref[...] = (
        jnp.dot(pooled, w_ref[...], preferred_element_type=jnp.float32) + b_ref[...]
    )


def _pick_tb_block(TB, bytes_per_row, vmem_budget=2 * 1024 * 1024):
    """Largest tb_block that divides TB, keeps the x tile under ~2 MiB (so 2 double-buffered
    copies stay far below every chip's default scoped VMEM limit, incl. v7x's 64 MiB physical),
    and is a multiple of 8 (dense sublanes + legal (8,128) blocks) unless it is all of TB."""
    max_rows = max(1, vmem_budget // max(1, bytes_per_row))
    for cand in range(min(TB, max_rows), 0, -1):
        if TB % cand != 0:
            continue
        if cand == TB or cand % 8 == 0:
            return cand
    return TB  # tiny problems: fall back to a single whole-array block


def init_mask_predictor_params(key, in_features, out_features, target):
    """Deterministic parameter init mirroring MaskPredictorNN.__init__ shape logic."""
    if target == -1:
        dim = 1
    else:
        dim = round(math.sqrt(target / in_features))
    eff_in = in_features if in_features == 3 else in_features // 4
    H = dim * dim * eff_in
    kw, kb = jax.random.split(key)
    bound = 1.0 / math.sqrt(H)  # PyTorch Conv2d default (kaiming_uniform a=sqrt(5), fan_in=H)
    weight = jax.random.uniform(kw, (out_features, H, 1, 1), jnp.float32, -bound, bound)
    bias = jax.random.uniform(kb, (out_features,), jnp.float32, -bound, bound)
    return dict(weight=weight, bias=bias, dim=dim, eff_in=eff_in, H=H)


def mask_predictor_forward(x, params, do_softmax, tb_block=None):
    """x: [T, N, C, Hs, Ws] with C == params['eff_in'] (the path where torch's try-branch succeeds)."""
    T, N, C, Hs, Ws = x.shape
    dim = params["dim"]
    assert dim == 1, "only the target=-1 (global average pool) configuration is implemented"
    assert C * dim * dim == params["H"], "channel count must match the 1x1 conv input"
    O = params["weight"].shape[0]
    TB, HW = T * N, Hs * Ws

    # Free, layout-preserving reshape: one dense row per (t, n) sample. Source dtype kept
    # (no extra HBM cast pass; bf16 inputs halve the kernel's HBM read bytes).
    x2d = x.reshape(TB, C * HW)
    w_t = params["weight"].reshape(O, C).T.astype(jnp.float32)   # [C, O], resident in VMEM
    b2d = params["bias"].reshape(1, O).astype(jnp.float32)       # [1, O], resident in VMEM

    if tb_block is None:
        tb_block = _pick_tb_block(TB, C * HW * x2d.dtype.itemsize)
    assert TB % tb_block == 0 and (tb_block % 8 == 0 or tb_block == TB)
    grid = (TB // tb_block,)

    cost = pl.CostEstimate(
        flops=2 * TB * C * HW + 2 * TB * C * O,
        transcendentals=TB * C if do_softmax else 0,
        bytes_accessed=TB * C * HW * x2d.dtype.itemsize + (C * O + O + TB * O) * 4,
    )

    out = pl.pallas_call(
        functools.partial(
            _mask_predictor_kernel, C=C, HW=HW, do_softmax=bool(do_softmax)
        ),
        out_shape=jax.ShapeDtypeStruct((TB, O), jnp.float32),
        grid=grid,
        in_specs=[
            pl.BlockSpec((tb_block, C * HW), lambda i: (i, 0)),
            pl.BlockSpec((C, O), lambda i: (0, 0)),
            pl.BlockSpec((1, O), lambda i: (0, 0)),
        ],
        out_specs=pl.BlockSpec((tb_block, O), lambda i: (i, 0)),
        compiler_params=pltpu.CompilerParams(
            dimension_semantics=("parallel",),  # lets v7x shard TB tiles across both TCs
        ),
        cost_estimate=cost,
    )(x2d, w_t, b2d)

    return out.reshape(T, N, O, 1, 1)


if __name__ == "__main__":
    key = jax.random.PRNGKey(0)
    kx, kp = jax.random.split(key)

    # MaskPredictorNN(in_features=16, out_features=8, target=-1, nclass=10, ratio=0.5, do_softmax=1)
    in_features, out_features, target, do_softmax = 16, 8, -1, 1
    T, N, Hs, Ws = 8, 2, 16, 16

    params = init_mask_predictor_params(kp, in_features, out_features, target)
    C = params["eff_in"]  # = in_features // 4 = 4; conv input channels
    x = jax.random.normal(kx, (T, N, C, Hs, Ws), jnp.float32)

    # tb_block=8 -> grid=(2,): exercises the tiled, double-buffered path even at toy size.
    out = jax.block_until_ready(
        mask_predictor_forward(x, params, do_softmax, tb_block=8)
    )

    # Pure-JAX reference of the same forward pass.
    pooled = x.reshape(T * N, C, Hs * Ws).mean(axis=-1)
    if do_softmax == 1:
        pooled = jax.nn.softmax(pooled, axis=1)
    ref = pooled @ params["weight"].reshape(out_features, C).T + params["bias"]
    ref = ref.reshape(T, N, out_features, 1, 1)

    assert out.shape == (T, N, out_features, 1, 1)
    # Tolerance accounts for the approximate EUP reciprocal in the softmax denominator.
    assert jnp.allclose(out, ref, atol=2e-3, rtol=2e-3)
    print("KERNEL_OK")
</pallas_src>

<mosaic_0001>
module attributes {stable_mosaic.version = 11 : i64} {
  func.func @_mask_predictor_kernel(%arg0: i32, %arg1: memref<8x1024xf32, #tpu.memory_space<vmem>>, %arg2: memref<4x8xf32, #tpu.memory_space<vmem>>, %arg3: memref<1x8xf32, #tpu.memory_space<vmem>>, %arg4: memref<8x8xf32, #tpu.memory_space<vmem>>) attributes {dimension_semantics = [#tpu.dimension_semantics<parallel>], iteration_bounds = array<i64: 2>, scalar_prefetch = 0 : i64, scratch_operands = 0 : i64, tpu.core_type = #tpu.core_type<tc>, window_params = [{transform_indices = @transform_0, window_bounds = array<i64: 8, 1024>}, {pipeline_mode = #tpu.pipeline_mode<synchronous>, transform_indices = @transform_1, window_bounds = array<i64: 4, 8>}, {pipeline_mode = #tpu.pipeline_mode<synchronous>, transform_indices = @transform_2, window_bounds = array<i64: 1, 8>}, {transform_indices = @transform_3, window_bounds = array<i64: 8, 8>}]} {
    %c0 = arith.constant 0 : index
    %c0_0 = arith.constant 0 : index
    %0 = vector.load %arg1[%c0, %c0_0] : memref<8x1024xf32, #tpu.memory_space<vmem>>, vector<8x256xf32>
    %cst = arith.constant dense<0.000000e+00> : vector<8xf32>
    %1 = vector.multi_reduction <add>, %0, %cst [1] : vector<8x256xf32> to vector<8xf32>
    %2 = vector.shape_cast %1 : vector<8xf32> to vector<8x1xf32>
    %cst_1 = arith.constant 3.906250e-03 : f32
    %3 = vector.broadcast %cst_1 : f32 to vector<8x1xf32>
    %4 = arith.mulf %2, %3 : vector<8x1xf32>
    %c0_2 = arith.constant 0 : index
    %c256 = arith.constant 256 : index
    %5 = vector.load %arg1[%c0_2, %c256] : memref<8x1024xf32, #tpu.memory_space<vmem>>, vector<8x256xf32>
    %cst_3 = arith.constant dense<0.000000e+00> : vector<8xf32>
    %6 = vector.multi_reduction <add>, %5, %cst_3 [1] : vector<8x256xf32> to vector<8xf32>
    %7 = vector.shape_cast %6 : vector<8xf32> to vector<8x1xf32>
    %cst_4 = arith.constant 3.906250e-03 : f32
    %8 = vector.broadcast %cst_4 : f32 to vector<8x1xf32>
    %9 = arith.mulf %7, %8 : vector<8x1xf32>
    %c0_5 = arith.constant 0 : index
    %c512 = arith.constant 512 : index
    %10 = vector.load %arg1[%c0_5, %c512] : memref<8x1024xf32, #tpu.memory_space<vmem>>, vector<8x256xf32>
    %cst_6 = arith.constant dense<0.000000e+00> : vector<8xf32>
    %11 = vector.multi_reduction <add>, %10, %cst_6 [1] : vector<8x256xf32> to vector<8xf32>
    %12 = vector.shape_cast %11 : vector<8xf32> to vector<8x1xf32>
    %cst_7 = arith.constant 3.906250e-03 : f32
    %13 = vector.broadcast %cst_7 : f32 to vector<8x1xf32>
    %14 = arith.mulf %12, %13 : vector<8x1xf32>
    %c0_8 = arith.constant 0 : index
    %c768 = arith.constant 768 : index
    %15 = vector.load %arg1[%c0_8, %c768] : memref<8x1024xf32, #tpu.memory_space<vmem>>, vector<8x256xf32>
    %cst_9 = arith.constant dense<0.000000e+00> : vector<8xf32>
    %16 = vector.multi_reduction <add>, %15, %cst_9 [1] : vector<8x256xf32> to vector<8xf32>
    %17 = vector.shape_cast %16 : vector<8xf32> to vector<8x1xf32>
    %cst_10 = arith.constant 3.906250e-03 : f32
    %18 = vector.broadcast %cst_10 : f32 to vector<8x1xf32>
    %19 = arith.mulf %17, %18 : vector<8x1xf32>
    %20 = tpu.concatenate %4, %9, %14, %19 in 1 : vector<8x1xf32>, vector<8x1xf32>, vector<8x1xf32>, vector<8x1xf32> -> vector<8x4xf32>
    %cst_11 = arith.constant dense<0xFF800000> : vector<8xf32>
    %21 = vector.multi_reduction <maximumf>, %20, %cst_11 [1] : vector<8x4xf32> to vector<8xf32>
    %22 = vector.shape_cast %21 : vector<8xf32> to vector<8x1xf32>
    %23 = vector.broadcast %22 : vector<8x1xf32> to vector<8x4xf32>
    %24 = arith.subf %20, %23 : vector<8x4xf32>
    %25 = math.exp %24 : vector<8x4xf32>
    %cst_12 = arith.constant dense<0.000000e+00> : vector<8xf32>
    %26 = vector.multi_reduction <add>, %25, %cst_12 [1] : vector<8x4xf32> to vector<8xf32>
    %27 = vector.shape_cast %26 : vector<8xf32> to vector<8x1xf32>
    %28 = tpu.reciprocal %27 {approx = true} : vector<8x1xf32> -> vector<8x1xf32>
    %29 = vector.broadcast %28 : vector<8x1xf32> to vector<8x4xf32>
    %30 = arith.mulf %25, %29 : vector<8x4xf32>
    %c0_13 = arith.constant 0 : index
    %c0_14 = arith.constant 0 : index
    %31 = vector.load %arg2[%c0_13, %c0_14] : memref<4x8xf32, #tpu.memory_space<vmem>>, vector<4x8xf32>
    %cst_15 = arith.constant dense<0.000000e+00> : vector<8x8xf32>
    %32 = tpu.matmul %30, %31, %cst_15 {dimension_numbers = #tpu.dot_dimension_numbers<[1], [0], [0], [1], [0, 0, 1, 1], [], []>} : vector<8x4xf32>, vector<4x8xf32>, vector<8x8xf32> -> vector<8x8xf32>
    %c0_16 = arith.constant 0 : index
    %c0_17 = arith.constant 0 : index
    %33 = vector.load %arg3[%c0_16, %c0_17] : memref<1x8xf32, #tpu.memory_space<vmem>>, vector<1x8xf32>
    %34 = vector.broadcast %33 : vector<1x8xf32> to vector<8x8xf32>
    %35 = arith.addf %32, %34 : vector<8x8xf32>
    %c0_18 = arith.constant 0 : index
    %c0_19 = arith.constant 0 : index
    %36 = vector.load %arg4[%c0_18, %c0_19] : memref<8x8xf32, #tpu.memory_space<vmem>>, vector<8x8xf32>
    tpu.vector_store %arg4[%c0_18, %c0_19], %35 {strides = array<i32>} : memref<8x8xf32, #tpu.memory_space<vmem>>, vector<8x8xf32>,
    return
  }
  func.func @transform_0(%arg0: i32) -> (i32, i32) {
    %c0_i32 = arith.constant 0 : i32
    %c0_i32_0 = arith.constant 0 : i32
    return %arg0, %c0_i32 : i32, i32
  }
  func.func @transform_1(%arg0: i32) -> (i32, i32) {
    %c0_i32 = arith.constant 0 : i32
    %c0_i32_0 = arith.constant 0 : i32
    %c0_i32_1 = arith.constant 0 : i32
    return %c0_i32, %c0_i32_0 : i32, i32
  }
  func.func @transform_2(%arg0: i32) -> (i32, i32) {
    %c0_i32 = arith.constant 0 : i32
    %c0_i32_0 = arith.constant 0 : i32
    %c0_i32_1 = arith.constant 0 : i32
    return %c0_i32, %c0_i32_0 : i32, i32
  }
  func.func @transform_3(%arg0: i32) -> (i32, i32) {
    %c0_i32 = arith.constant 0 : i32
    %c0_i32_0 = arith.constant 0 : i32
    return %arg0, %c0_i32 : i32, i32
  }
}

</mosaic_0001>

<bundles_post_ra>
// kernel: tpu_custom_call.1
= control target key start
LH: loop header
LB: loop body
LE: loop exit
PB: predicated region body
PF: predicated region fallthrough
CT: control target
= control target key end

     0   :  { %8 = vsyncpa [#allocation3], 0  ;;  %s760_s0 = inlined_call_operand.hbm [shape: f32[16,1024], index: 0, kind: input, shape index: {}]   ;;  %s761_s1 = inlined_call_operand.hbm [shape: f32[4,8], index: 1, kind: input, shape index: {}]   ;;  %s762_s2 = inlined_call_operand.vmem [shape: f32[1,8], index: 2, kind: input, shape index: {}]   ;;  %s763_s3 = inlined_call_operand.vmem [shape: f32[16,8], index: 3, kind: output, shape index: {}]  }
   0x1   :  { %10 = vsyncpa [#allocation3 + $0x1], 0 }
   0x2   :  { %11 = vsyncpa [#allocation5], 0  ;;  %s606_s12 = smov 0   ;;  %s608_s13 = smov 0  }
   0x3   :  { %s610_s14 = smov 0   ;;  %s612_s15 = smov 0  }
   0x4 LB: > { %s625_s16 = sadd.s32 4294967295, %s580_s15   ;;  %p37_p0 = scmp.ne.s32.totalorder %s572_s13, %s568_s12  ;;  %s580_s15 = sphi %s612_s15, %s781_s15   ;;  %s576_s14 = sphi %s610_s14, %s780_s14   ;;  %s572_s13 = sphi %s608_s13, %s779_s13   ;;  %s568_s12 = sphi %s606_s12, %s778_s12  }
   0x5   : > { %p764_p1 = scmp.eq.s32.totalorder %s625_s16, 0  ;;  %p405_p2 = scmp.ge.s32.totalorder %s580_s15, 1 }
   0x6   : > { %p116_p3 = scmp.lt.s32.totalorder %s580_s15, 3  ;;  %s582_s19 = smov [#allocation4]  }
   0x7   : > { %p633_p4 = por %p764_p1, %p37_p0  ;;  %s129_s20 = sshll.u32 %s582_s19, 4  ;;  %s130_s20 = int_to_ptr.vmem [resolvable:$true] %s129_s20 }
   0x8   : > { %p637_p5 = pnand %p405_p2, %p116_p3  ;;  %s644_s21 = sadd.s32 1, %s580_s15  }
   0x9   : > { %s767_s17 = scalar_select %p633_p4, 1, 0 }
   0xa   : > { %s768_s18 = scalar_select %p637_p5, 1, 0 }
   0xb   : > { %p434_p6 = pneg %p637_p5  ;;  %s21_s23 = ssub.s32 %s580_s15, %s644_s21 }
   0xc   : > { %p654_p8 = scmp.eq.s32.totalorder %s21_s23, 0  ;;  %s24_s25 = sadd.s32 1, %s576_s14 }
   0xd   : > { %p648_p7 = pnand %p434_p6, %p764_p1  ;;  %s484_s28 = scalar_lea.hbm %s761_s1, 64 }
   0xe   : > { %s770_s24 = scalar_select %p654_p8, 1, 0 }
   0xf   : > { %p485_p10 = scmp.ne.s32.totalorder %s761_s1, %s484_s28  ;;  %p486_p11 = pneg %p648_p7 }
  0x10   : > { %p491_p0 = scmp.lt.u32.totalorder %s484_s28, %s761_s1 }
  0x11   : > { %p487_p12 = pnand %p486_p11, %p485_p10 }
  0x13   : > { %p488_p13 = pneg %p487_p12 }
  0x15   : > { %p493_p2 = pnand %p491_p0, %p488_p13 }
  0x17   : > { %496 = shalt.err (!%p493_p2)
}
  0x18   : > { %s497_s6 = scalar_lea.vmem %s130_s20, 64  ;;  %p505_p9 = scmp.lt.s32.totalorder %s130_s20, %s130_s20 }
  0x19   : > { %p498_p3 = scmp.ne.s32.totalorder %s130_s20, %s497_s6  ;;  %p506_p4 = scmp.lt.s32.totalorder %s497_s6, %s497_s6 }
  0x1b   : > { %p500_p6 = pnand %p498_p3, %p486_p11  ;;  %p507_p5 = por %p506_p4, %p505_p9 }
  0x1d   : > { %p501_p1 = pneg %p500_p6 }
  0x1f   : > { %p508_p8 = pnand %p507_p5, %p501_p1 }
  0x21   : > { %511 = shalt.err (!%p508_p8)
}
  0x22   : > { %437 = dma.hbm_to_vmem [thread:$0]  (!%p648_p7), %s761_s1, 64, %s130_s20, [#allocation5]  }
  0x23   : > { %p771_p10 = scmp.ne.s32.totalorder %s770_s24, 0  ;;  %p32_p4 = scmp.eq.s32.totalorder %s580_s15, 0 }
  0x24   : > { %p443_p1 = scmp.lt.s32.totalorder %s580_s15, 2  ;;  %s143_s10 = sand.u32 1, %s576_s14  }
  0x25   : > { %s680_s9 = scalar_select %p771_p10, %s576_s14, %s24_s25  }
  0x26   : > { %s420_s11 = sshll.u32 %s580_s15, 10  ;;  %p772_p5 = scmp.ne.s32.totalorder %s576_s14, %s572_s13 }
  0x27   : > { %s408_s12 = sshll.u32 %s143_s10, 6  ;;  %s692_s23 = scalar_lea.hbm %s760_s0, %s420_s11 }
  0x28   : > { %p33_p8 = por %p32_p4, %p772_p5  ;;  %s147_s24 = scalar_lea.vmem [#allocation2], %s408_s12 }
  0x29   : > { %s155_s15 = sshll.u32 %s147_s24, 4  ;;  %s144_s25 = scalar_lea.sflag [#allocation3], %s143_s10  ;;  %s698_s15 = int_to_ptr.vmem [resolvable:$true] %s155_s15 }
  0x2a   : > { %p694_p7 = pnand %p443_p1, %p33_p8  ;;  %s512_s26 = scalar_lea.hbm %s692_s23, 1024 }
  0x2b   : > { %p513_p9 = scmp.ne.s32.totalorder %s692_s23, %s512_s26  ;;  %s517_s29 = scalar_lea.hbm %s760_s0, 2048 }
  0x2c   : > { %p514_p11 = pneg %p694_p7  ;;  %p518_p0 = scmp.lt.u32.totalorder %s692_s23, %s760_s0 }
  0x2d   : > { %p519_p2 = scmp.lt.u32.totalorder %s517_s29, %s512_s26  ;;  %p521_p6 = scmp.lt.u32.totalorder %s512_s26, %s692_s23 }
  0x2e   : > { %p515_p12 = pnand %p514_p11, %p513_p9 }
  0x2f   : > { %p520_p3 = por %p519_p2, %p518_p0 }
  0x30   : > { %p516_p13 = pneg %p515_p12 }
  0x31   : > { %p522_p10 = por %p521_p6, %p520_p3 }
  0x33   : > { %p523_p4 = pnand %p522_p10, %p516_p13 }
  0x35   : > { %526 = shalt.err (!%p523_p4)
}
  0x36   : > { %s527_s5 = scalar_lea.vmem %s698_s15, 1024  ;;  %s583_s6 = smov [#allocation2]  }
  0x37   : > { %p528_p1 = scmp.ne.s32.totalorder %s698_s15, %s527_s5  ;;  %s532_s7 = sshll.u32 %s583_s6, 4  ;;  %s533_s7 = int_to_ptr.vmem [resolvable:$false] %s532_s7 }
  0x38   : > { %s534_s8 = scalar_lea.vmem %s533_s7, 2048  ;;  %p535_p9 = scmp.lt.s32.totalorder %s698_s15, %s533_s7 }
  0x39   : > { %p530_p5 = pnand %p528_p1, %p514_p11  ;;  %p536_p12 = scmp.lt.s32.totalorder %s534_s8, %s527_s5 }
  0x3b   : > { %p531_p8 = pneg %p530_p5  ;;  %p537_p0 = por %p536_p12, %p535_p9 }
  0x3d   : > { %p538_p2 = pnand %p537_p0, %p531_p8 }
  0x3f   : > { %541 = shalt.err (!%p538_p2)
}
  0x40   : > { %441 = dma.hbm_to_vmem [thread:$0]  (!%p694_p7), %s692_s23, 1024, %s698_s15, %s144_s25  }
  0x41   : > { %p774_p13 = scmp.ne.s32.totalorder %s768_s18, 0 }
  0x42   : > { %s166_s10 = sand.u32 (!%p774_p13), 1, %s572_s13   ;;  %p775_p11 = scmp.ne.s32.totalorder (!%p774_p13), %s767_s17, 0 }
  0x43   : > { %164 = sbr.rel (%p774_p13) target bundleno = 761 (0x2f9), region = 32  ;;  %s412_s11 = sshll.u32 (!%p774_p13), %s166_s10, 6 }
  0x44   : > { %s167_s12 = scalar_lea.sflag (!%p774_p13), [#allocation3], %s166_s10  ;;  %s170_s19 = scalar_lea.vmem (!%p774_p13), [#allocation2], %s412_s11 }
  0x4a   : > { %559 = dma.done.wait (%p775_p11), %s167_s12, 1024  }
  0x4b   : > { %561 = vsyncadd (%p775_p11), %s167_s12, 4294966272  ;;  %p776_p3 = scmp.eq.s32.totalorder %s625_s16, 0 }
  0x4d   : > { %563 = dma.done.wait (%p776_p3), [#allocation5], 64   ;;  %p777_p6 = pmov %p776_p3 }
  0x4e   : > { %v200_v0 = vld [vmem:[%s170_s19] sm:$0xff]  ;;  %v201_v1 = vld [vmem:[%s170_s19 + $0x8] sm:$0xff]  ;;  %v206_v5 = vld [vmem:[%s170_s19 + $0x10] sm:$0xff]  ;;  %vm224_vm0 = vcmask 7168   ;;  %vm226_vm1 = vcmask 15360   ;;  %vm228_vm2 = vcmask 23552  }
  0x4f   : > { %565 = vsyncadd (%p777_p6), [#allocation5], 4294967232  ;;  %v212_v2 = vld [vmem:[%s170_s19 + $0x20] sm:$0xff]  ;;  %v202_v3 = vadd.f32 %v201_v1, %v200_v0  ;;  %v213_v4 = vld [vmem:[%s170_s19 + $0x28] sm:$0xff]  ;;  %vm230_vm3 = vcmask 31744   ;;  %vm253_vm4 = vcmask 1043456  }
  0x50   : > { %v207_v6 = vld [vmem:[%s170_s19 + $0x18] sm:$0xff]  ;;  %v214_v7 = vadd.f32 %v213_v4, %v212_v2  ;;  %v218_v8 = vld [vmem:[%s170_s19 + $0x30] sm:$0xff]  ;;  %v242_v29 = vld [vmem:[#allocation4] sm:$0xf]  ;;  %v584_v30 = vmov 0.0   ;;  %vm585_vm5 = vmmov 0  }
  0x51   : > { %v219_v9 = vld [vmem:[%s170_s19 + $0x38] sm:$0xff]  ;;  %203 = vadd.xlane.f32.xlu0 %v202_v3  ;;  %v208_v10 = vadd.f32 %v207_v6, %v206_v5  ;;  %423 = vmatprep.subr.mxu0 %v584_v30  ;;  %p196_p7 = scmp.lt.s32.totalorder %s625_s16, 1  ;;  %v415_v34 = vld [vmem:[%s762_s2] ss:$0 sm:$0xff]  ;;  %vm327_vm6 = vcmask 64512  }
  0x52   : > { %215 = vadd.xlane.f32.xlu1 %v214_v7  ;;  %v220_v11 = vadd.f32 %v219_v9, %v218_v8  ;;  %425 = vmatprep.mubr.msk.f32.mxu0 %vm585_vm5, %v584_v30 }
  0x53   : > { %424 = vmatpush3.msk.msra.mxu0 %vm253_vm4, %v242_v29  ;;  %s783_s16 = smov (!%p196_p7, %s625_s16), 1 }
  0x54   : > { %s414_s17 = sshll.u32 %s783_s16, 3 }
  0x55   : > { %209 = vadd.xlane.f32.xlu0 %v208_v10  ;;  %s199_s24 = scalar_lea.vmem %s763_s3, %s414_s17 }
  0x56   : > { %221 = vadd.xlane.f32.xlu1 %v220_v11 }
  0xde   : > { %v204_v12 = vpop.xlane.xlu0 %203 }
  0xdf   : > { %v216_v13 = vpop.xlane.xlu1 %215  ;;  %v205_v15 = vmul.f32 0.00390625, %v204_v12 }
  0xe0   : > { %v217_v18 = vmul.f32 0.00390625, %v216_v13 }
  0xe2   : > { %v210_v14 = vpop.xlane.xlu0 %209 }
  0xe3   : > { %v211_v16 = vmul.f32 0.00390625, %v210_v14  ;;  %v222_v17 = vpop.xlane.xlu1 %221 }
  0xe4   : > { %v223_v19 = vmul.f32 0.00390625, %v222_v17 }
  0xe5   : > { %v225_v20 = vsel %vm224_vm0, %v205_v15, %v211_v16 }
  0xe6   : > { %v227_v21 = vsel %vm226_vm1, %v225_v20, %v217_v18 }
  0xe7   : > { %v229_v22 = vsel %vm228_vm2, %v227_v21, %v223_v19 }
  0xe8   : > { %v231_v23 = vsel %vm230_vm3, %v229_v22, -inf }
  0xe9   : > { %232 = vmax.xlane.f32.xlu0 %v231_v23 }
 0x176   : > { %v233_v24 = vpop.xlane.xlu0 %232 }
 0x177   : > { %v234_v25 = vsub.f32 %v229_v22, %v233_v24 }
 0x179   : > { %v235_v26 = vmul.f32 1.442695, %v234_v25 }
 0x17b   : > { %480 = vpow2.f32 %v235_v26 }
 0x185   : > { %v481_v27 = vpop.eup %480 }
 0x186   : > { %v237_v28 = vsel %vm230_vm3, %v481_v27, 0.0 }
 0x187   : > { %238 = vadd.xlane.f32.xlu1 %v237_v28 }
 0x214   : > { %v239_v31 = vpop.xlane.xlu1 %238 }
 0x215   : > { %482 = vrcp.f32 %v239_v31 }
 0x21f   : > { %v483_v32 = vpop.eup %482 }
 0x220   : > { %v241_v33 = vmul.f32 %v483_v32, %v481_v27 }
 0x222   : > { %426 = vmatmul.mubr.msk.f32.vlgmr.msra.gmra.mrb[0].mxu0 %vm230_vm3, %v241_v33 }
 0x2f5   : > { %v323_v35 = vpop.f32.mrb[0].mxu0 }
 0x2f6   : > { %v324_v36 = vadd.f32 %v415_v34, %v323_v35  ;;  %v427_v37 = vpop.f32.mrb[1].mxu0 }
 0x2f8   : > { %328 = vst.msk [vmem:[%s199_s24] sm:$0xff] %vm327_vm6, %v324_v36 }
 0x2f9 PF: > { %p14_p10 = scmp.ge.s32.totalorder %s644_s21, 4   ;;  %s778_s12 = smov %s572_s13 }
 0x2fa   : > { %s779_s13 = smov %s576_s14  ;;  %s780_s14 = smov %s680_s9 }
 0x2fb   : > { %s781_s15 = smov %s644_s21  ;;  %16 = sbr.rel (!%p14_p10) target bundleno = 4 (0x4), region = 76 }
 0x302   :  { %348 = vsyncpa [#allocation3], 1 }
 0x303   :  { %350 = vsyncpa [#allocation3 + $0x1], 1 }
 0x304   :  { %351 = vsyncpa [#allocation5], 1 }

</bundles_post_ra>
